<compile_context>
chip_gen: v7x
topology: tpu7x:2x2x1
jax: 0.10.0
libtpu: 0.0.40
codegen_flags: <defaults>
</compile_context>

<pallas_src>
import jax
import jax.numpy as jnp
from jax.experimental import pallas as pl
from jax.experimental.pallas import tpu as pltpu

# Padded (lane/sublane aligned) dimensions.
F_PAD = 128    # input features: 7   -> 128
H1_PAD = 256   # hidden 1:       200 -> 256
H2_PAD = 128   # hidden 2:       100 -> 128
H3_PAD = 128   # hidden 3:       10  -> 128
OUT_PAD = 128  # output:         1   -> 128 (lane-dense store; col 0 is real)


def _sigmoid_eup(h):
    # Mathematically identical to 1/(1+exp(-h)); tanh lowers to the EUP slot.
    return 0.5 * jnp.tanh(0.5 * h) + 0.5


def mlp_kernel(x_ref,
               w1_ref, b1_ref,
               w2_ref, b2_ref,
               w3_ref, b3_ref,
               w4_ref, b4_ref,
               o_ref):
    # Layer 1: (TB,128) @ (128,256) + (1,256)
    h = jnp.dot(x_ref[...], w1_ref[...], preferred_element_type=jnp.float32)
    h = _sigmoid_eup(h + b1_ref[...])
    # Layer 2: (TB,256) @ (256,128) + (1,128)
    h = jnp.dot(h, w2_ref[...], preferred_element_type=jnp.float32)
    h = _sigmoid_eup(h + b2_ref[...])
    # Layer 3: (TB,128) @ (128,128) + (1,128)
    h = jnp.dot(h, w3_ref[...], preferred_element_type=jnp.float32)
    h = _sigmoid_eup(h + b3_ref[...])
    # Layer 4: (TB,128) @ (128,128) + (1,128)  (only column 0 is meaningful)
    h = jnp.dot(h, w4_ref[...], preferred_element_type=jnp.float32)
    h = _sigmoid_eup(h + b4_ref[...])
    o_ref[...] = h.astype(o_ref.dtype)


def _round_up(n, m):
    return ((n + m - 1) // m) * m


def _pad2d(a, shape):
    """Zero-pad a 2-D array up to `shape`."""
    out = jnp.zeros(shape, a.dtype)
    return out.at[: a.shape[0], : a.shape[1]].set(a)


def titanic_mlp(x, params, block_batch=256):
    """Forward pass of the Titanic MLP via a single fused Pallas kernel.

    x: (B, 7) float32.  params: 4 tuples of (W (in,out), b (1,out)).
    Returns (B, 1) float32 probabilities.
    """
    (w1, b1), (w2, b2), (w3, b3), (w4, b4) = params
    B = x.shape[0]

    # Batch tile: multiple of 8 sublanes, at most `block_batch` rows.
    tb = min(block_batch, _round_up(max(B, 1), 8))
    B_pad = _round_up(B, tb)
    n_tiles = B_pad // tb

    # Zero-pad everything to aligned shapes (padding is exact, see header).
    x_p = _pad2d(x.astype(jnp.float32), (B_pad, F_PAD))
    w1_p = _pad2d(w1, (F_PAD, H1_PAD))
    b1_p = _pad2d(b1, (1, H1_PAD))
    w2_p = _pad2d(w2, (H1_PAD, H2_PAD))
    b2_p = _pad2d(b2, (1, H2_PAD))
    w3_p = _pad2d(w3, (H2_PAD, H3_PAD))
    b3_p = _pad2d(b3, (1, H3_PAD))
    w4_p = _pad2d(w4, (H3_PAD, OUT_PAD))
    b4_p = _pad2d(b4, (1, OUT_PAD))

    def resident(shape):
        # Constant block index -> stays resident in VMEM across grid steps.
        return pl.BlockSpec(shape, lambda i: (0, 0))

    out_pad = pl.pallas_call(
        mlp_kernel,
        out_shape=jax.ShapeDtypeStruct((B_pad, OUT_PAD), jnp.float32),
        grid_spec=pltpu.PrefetchScalarGridSpec(
            num_scalar_prefetch=0,
            grid=(n_tiles,),
            in_specs=[
                pl.BlockSpec((tb, F_PAD), lambda i: (i, 0)),   # x tile
                resident((F_PAD, H1_PAD)), resident((1, H1_PAD)),
                resident((H1_PAD, H2_PAD)), resident((1, H2_PAD)),
                resident((H2_PAD, H3_PAD)), resident((1, H3_PAD)),
                resident((H3_PAD, OUT_PAD)), resident((1, OUT_PAD)),
            ],
            out_specs=pl.BlockSpec((tb, OUT_PAD), lambda i: (i, 0)),
        ),
        compiler_params=pltpu.CompilerParams(
            dimension_semantics=("parallel",),  # megacore on v7x
        ),
    )(x_p, w1_p, b1_p, w2_p, b2_p, w3_p, b3_p, w4_p, b4_p)

    # Strip batch padding and keep the single real output column.
    return out_pad[:B, 0:1]


def init_linear(key, fan_in, fan_out):
    # Deterministic init mimicking PyTorch's default U(-1/sqrt(fan_in), +).
    kw, kb = jax.random.split(key)
    bound = 1.0 / jnp.sqrt(jnp.float32(fan_in))
    w = jax.random.uniform(kw, (fan_in, fan_out), jnp.float32, -bound, bound)
    b = jax.random.uniform(kb, (1, fan_out), jnp.float32, -bound, bound)
    return w, b


def reference_mlp(x, params):
    h = x
    for (w, b) in params:
        h = jax.nn.sigmoid(h @ w + b)
    return h


if __name__ == "__main__":
    key = jax.random.PRNGKey(0)
    k_x, k1, k2, k3, k4 = jax.random.split(key, 5)

    B = 37  # small, deliberately not a multiple of the tile size
    x = jax.random.normal(k_x, (B, 7), jnp.float32)

    params = (
        init_linear(k1, 7, 200),
        init_linear(k2, 200, 100),
        init_linear(k3, 100, 10),
        init_linear(k4, 10, 1),
    )

    ref = reference_mlp(x, params)

    # Multi-tile path: 16-row tiles -> grid of 3, padded last tile.
    out_small = jax.block_until_ready(titanic_mlp(x, params, block_batch=16))
    assert out_small.shape == (B, 1)
    assert jnp.allclose(out_small, ref, atol=1e-4, rtol=1e-4), "mismatch (tiled)"

    # Default large-tile path.
    out_big = jax.block_until_ready(titanic_mlp(x, params))
    assert out_big.shape == (B, 1)
    assert jnp.allclose(out_big, ref, atol=1e-4, rtol=1e-4), "mismatch (default)"

    print("KERNEL_OK")
</pallas_src>

<mosaic_0001>
module attributes {stable_mosaic.version = 11 : i64} {
  func.func @mlp_kernel(%arg0: i32, %arg1: memref<16x128xf32, #tpu.memory_space<vmem>>, %arg2: memref<128x256xf32, #tpu.memory_space<vmem>>, %arg3: memref<1x256xf32, #tpu.memory_space<vmem>>, %arg4: memref<256x128xf32, #tpu.memory_space<vmem>>, %arg5: memref<1x128xf32, #tpu.memory_space<vmem>>, %arg6: memref<128x128xf32, #tpu.memory_space<vmem>>, %arg7: memref<1x128xf32, #tpu.memory_space<vmem>>, %arg8: memref<128x128xf32, #tpu.memory_space<vmem>>, %arg9: memref<1x128xf32, #tpu.memory_space<vmem>>, %arg10: memref<16x128xf32, #tpu.memory_space<vmem>>) attributes {dimension_semantics = [#tpu.dimension_semantics<parallel>], iteration_bounds = array<i64: 3>, scalar_prefetch = 0 : i64, scratch_operands = 0 : i64, tpu.core_type = #tpu.core_type<tc>, window_params = [{transform_indices = @transform_0, window_bounds = array<i64: 16, 128>}, {pipeline_mode = #tpu.pipeline_mode<synchronous>, transform_indices = @transform_1, window_bounds = array<i64: 128, 256>}, {pipeline_mode = #tpu.pipeline_mode<synchronous>, transform_indices = @transform_2, window_bounds = array<i64: 1, 256>}, {pipeline_mode = #tpu.pipeline_mode<synchronous>, transform_indices = @transform_3, window_bounds = array<i64: 256, 128>}, {pipeline_mode = #tpu.pipeline_mode<synchronous>, transform_indices = @transform_4, window_bounds = array<i64: 1, 128>}, {pipeline_mode = #tpu.pipeline_mode<synchronous>, transform_indices = @transform_5, window_bounds = array<i64: 128, 128>}, {pipeline_mode = #tpu.pipeline_mode<synchronous>, transform_indices = @transform_6, window_bounds = array<i64: 1, 128>}, {pipeline_mode = #tpu.pipeline_mode<synchronous>, transform_indices = @transform_7, window_bounds = array<i64: 128, 128>}, {pipeline_mode = #tpu.pipeline_mode<synchronous>, transform_indices = @transform_8, window_bounds = array<i64: 1, 128>}, {transform_indices = @transform_9, window_bounds = array<i64: 16, 128>}]} {
    %c0 = arith.constant 0 : index
    %c0_0 = arith.constant 0 : index
    %0 = vector.load %arg1[%c0, %c0_0] : memref<16x128xf32, #tpu.memory_space<vmem>>, vector<16x128xf32>
    %c0_1 = arith.constant 0 : index
    %c0_2 = arith.constant 0 : index
    %1 = vector.load %arg2[%c0_1, %c0_2] : memref<128x256xf32, #tpu.memory_space<vmem>>, vector<128x256xf32>
    %cst = arith.constant dense<0.000000e+00> : vector<16x256xf32>
    %2 = tpu.matmul %0, %1, %cst {dimension_numbers = #tpu.dot_dimension_numbers<[1], [0], [0], [1], [0, 0, 1, 1], [], []>} : vector<16x128xf32>, vector<128x256xf32>, vector<16x256xf32> -> vector<16x256xf32>
    %c0_3 = arith.constant 0 : index
    %c0_4 = arith.constant 0 : index
    %3 = vector.load %arg3[%c0_3, %c0_4] : memref<1x256xf32, #tpu.memory_space<vmem>>, vector<1x256xf32>
    %4 = vector.broadcast %3 : vector<1x256xf32> to vector<16x256xf32>
    %5 = arith.addf %2, %4 : vector<16x256xf32>
    %cst_5 = arith.constant 5.000000e-01 : f32
    %6 = vector.broadcast %cst_5 : f32 to vector<16x256xf32>
    %7 = arith.mulf %6, %5 : vector<16x256xf32>
    %8 = math.tanh %7 : vector<16x256xf32>
    %cst_6 = arith.constant 5.000000e-01 : f32
    %9 = vector.broadcast %cst_6 : f32 to vector<16x256xf32>
    %10 = arith.mulf %9, %8 : vector<16x256xf32>
    %cst_7 = arith.constant 5.000000e-01 : f32
    %11 = vector.broadcast %cst_7 : f32 to vector<16x256xf32>
    %12 = arith.addf %10, %11 : vector<16x256xf32>
    %c0_8 = arith.constant 0 : index
    %c0_9 = arith.constant 0 : index
    %13 = vector.load %arg4[%c0_8, %c0_9] : memref<256x128xf32, #tpu.memory_space<vmem>>, vector<256x128xf32>
    %cst_10 = arith.constant dense<0.000000e+00> : vector<16x128xf32>
    %14 = tpu.matmul %12, %13, %cst_10 {dimension_numbers = #tpu.dot_dimension_numbers<[1], [0], [0], [1], [0, 0, 1, 1], [], []>} : vector<16x256xf32>, vector<256x128xf32>, vector<16x128xf32> -> vector<16x128xf32>
    %c0_11 = arith.constant 0 : index
    %c0_12 = arith.constant 0 : index
    %15 = vector.load %arg5[%c0_11, %c0_12] : memref<1x128xf32, #tpu.memory_space<vmem>>, vector<1x128xf32>
    %16 = vector.broadcast %15 : vector<1x128xf32> to vector<16x128xf32>
    %17 = arith.addf %14, %16 : vector<16x128xf32>
    %cst_13 = arith.constant 5.000000e-01 : f32
    %18 = vector.broadcast %cst_13 : f32 to vector<16x128xf32>
    %19 = arith.mulf %18, %17 : vector<16x128xf32>
    %20 = math.tanh %19 : vector<16x128xf32>
    %cst_14 = arith.constant 5.000000e-01 : f32
    %21 = vector.broadcast %cst_14 : f32 to vector<16x128xf32>
    %22 = arith.mulf %21, %20 : vector<16x128xf32>
    %cst_15 = arith.constant 5.000000e-01 : f32
    %23 = vector.broadcast %cst_15 : f32 to vector<16x128xf32>
    %24 = arith.addf %22, %23 : vector<16x128xf32>
    %c0_16 = arith.constant 0 : index
    %c0_17 = arith.constant 0 : index
    %25 = vector.load %arg6[%c0_16, %c0_17] : memref<128x128xf32, #tpu.memory_space<vmem>>, vector<128x128xf32>
    %cst_18 = arith.constant dense<0.000000e+00> : vector<16x128xf32>
    %26 = tpu.matmul %24, %25, %cst_18 {dimension_numbers = #tpu.dot_dimension_numbers<[1], [0], [0], [1], [0, 0, 1, 1], [], []>} : vector<16x128xf32>, vector<128x128xf32>, vector<16x128xf32> -> vector<16x128xf32>
    %c0_19 = arith.constant 0 : index
    %c0_20 = arith.constant 0 : index
    %27 = vector.load %arg7[%c0_19, %c0_20] : memref<1x128xf32, #tpu.memory_space<vmem>>, vector<1x128xf32>
    %28 = vector.broadcast %27 : vector<1x128xf32> to vector<16x128xf32>
    %29 = arith.addf %26, %28 : vector<16x128xf32>
    %cst_21 = arith.constant 5.000000e-01 : f32
    %30 = vector.broadcast %cst_21 : f32 to vector<16x128xf32>
    %31 = arith.mulf %30, %29 : vector<16x128xf32>
    %32 = math.tanh %31 : vector<16x128xf32>
    %cst_22 = arith.constant 5.000000e-01 : f32
    %33 = vector.broadcast %cst_22 : f32 to vector<16x128xf32>
    %34 = arith.mulf %33, %32 : vector<16x128xf32>
    %cst_23 = arith.constant 5.000000e-01 : f32
    %35 = vector.broadcast %cst_23 : f32 to vector<16x128xf32>
    %36 = arith.addf %34, %35 : vector<16x128xf32>
    %c0_24 = arith.constant 0 : index
    %c0_25 = arith.constant 0 : index
    %37 = vector.load %arg8[%c0_24, %c0_25] : memref<128x128xf32, #tpu.memory_space<vmem>>, vector<128x128xf32>
    %cst_26 = arith.constant dense<0.000000e+00> : vector<16x128xf32>
    %38 = tpu.matmul %36, %37, %cst_26 {dimension_numbers = #tpu.dot_dimension_numbers<[1], [0], [0], [1], [0, 0, 1, 1], [], []>} : vector<16x128xf32>, vector<128x128xf32>, vector<16x128xf32> -> vector<16x128xf32>
    %c0_27 = arith.constant 0 : index
    %c0_28 = arith.constant 0 : index
    %39 = vector.load %arg9[%c0_27, %c0_28] : memref<1x128xf32, #tpu.memory_space<vmem>>, vector<1x128xf32>
    %40 = vector.broadcast %39 : vector<1x128xf32> to vector<16x128xf32>
    %41 = arith.addf %38, %40 : vector<16x128xf32>
    %cst_29 = arith.constant 5.000000e-01 : f32
    %42 = vector.broadcast %cst_29 : f32 to vector<16x128xf32>
    %43 = arith.mulf %42, %41 : vector<16x128xf32>
    %44 = math.tanh %43 : vector<16x128xf32>
    %cst_30 = arith.constant 5.000000e-01 : f32
    %45 = vector.broadcast %cst_30 : f32 to vector<16x128xf32>
    %46 = arith.mulf %45, %44 : vector<16x128xf32>
    %cst_31 = arith.constant 5.000000e-01 : f32
    %47 = vector.broadcast %cst_31 : f32 to vector<16x128xf32>
    %48 = arith.addf %46, %47 : vector<16x128xf32>
    %c0_32 = arith.constant 0 : index
    %c0_33 = arith.constant 0 : index
    %49 = vector.load %arg10[%c0_32, %c0_33] : memref<16x128xf32, #tpu.memory_space<vmem>>, vector<16x128xf32>
    tpu.vector_store %arg10[%c0_32, %c0_33], %48 {strides = array<i32>} : memref<16x128xf32, #tpu.memory_space<vmem>>, vector<16x128xf32>,
    return
  }
  func.func @transform_0(%arg0: i32) -> (i32, i32) {
    %c0_i32 = arith.constant 0 : i32
    %c0_i32_0 = arith.constant 0 : i32
    return %arg0, %c0_i32 : i32, i32
  }
  func.func @transform_1(%arg0: i32) -> (i32, i32) {
    %c0_i32 = arith.constant 0 : i32
    %c0_i32_0 = arith.constant 0 : i32
    %c0_i32_1 = arith.constant 0 : i32
    return %c0_i32, %c0_i32_0 : i32, i32
  }
  func.func @transform_2(%arg0: i32) -> (i32, i32) {
    %c0_i32 = arith.constant 0 : i32
    %c0_i32_0 = arith.constant 0 : i32
    %c0_i32_1 = arith.constant 0 : i32
    return %c0_i32, %c0_i32_0 : i32, i32
  }
  func.func @transform_3(%arg0: i32) -> (i32, i32) {
    %c0_i32 = arith.constant 0 : i32
    %c0_i32_0 = arith.constant 0 : i32
    %c0_i32_1 = arith.constant 0 : i32
    return %c0_i32, %c0_i32_0 : i32, i32
  }
  func.func @transform_4(%arg0: i32) -> (i32, i32) {
    %c0_i32 = arith.constant 0 : i32
    %c0_i32_0 = arith.constant 0 : i32
    %c0_i32_1 = arith.constant 0 : i32
    return %c0_i32, %c0_i32_0 : i32, i32
  }
  func.func @transform_5(%arg0: i32) -> (i32, i32) {
    %c0_i32 = arith.constant 0 : i32
    %c0_i32_0 = arith.constant 0 : i32
    %c0_i32_1 = arith.constant 0 : i32
    return %c0_i32, %c0_i32_0 : i32, i32
  }
  func.func @transform_6(%arg0: i32) -> (i32, i32) {
    %c0_i32 = arith.constant 0 : i32
    %c0_i32_0 = arith.constant 0 : i32
    %c0_i32_1 = arith.constant 0 : i32
    return %c0_i32, %c0_i32_0 : i32, i32
  }
  func.func @transform_7(%arg0: i32) -> (i32, i32) {
    %c0_i32 = arith.constant 0 : i32
    %c0_i32_0 = arith.constant 0 : i32
    %c0_i32_1 = arith.constant 0 : i32
    return %c0_i32, %c0_i32_0 : i32, i32
  }
  func.func @transform_8(%arg0: i32) -> (i32, i32) {
    %c0_i32 = arith.constant 0 : i32
    %c0_i32_0 = arith.constant 0 : i32
    %c0_i32_1 = arith.constant 0 : i32
    return %c0_i32, %c0_i32_0 : i32, i32
  }
  func.func @transform_9(%arg0: i32) -> (i32, i32) {
    %c0_i32 = arith.constant 0 : i32
    %c0_i32_0 = arith.constant 0 : i32
    return %arg0, %c0_i32 : i32, i32
  }
}

</mosaic_0001>

<bundles_post_ra>
// kernel: tpu_custom_call.1
= control target key start
LH: loop header
LB: loop body
LE: loop exit
PB: predicated region body
PF: predicated region fallthrough
CT: control target
= control target key end

     0   :  { %s1997_s0 = inlined_call_operand.hbm [shape: f32[48,128], index: 0, kind: input, shape index: {}]   ;;  %s1998_s1 = inlined_call_operand.hbm [shape: f32[128,256], index: 1, kind: input, shape index: {}]   ;;  %s1999_s2 = inlined_call_operand.vmem [shape: f32[1,256], index: 2, kind: input, shape index: {}]   ;;  %s2000_s3 = inlined_call_operand.hbm [shape: f32[256,128], index: 3, kind: input, shape index: {}]   ;;  %s2001_s4 = inlined_call_operand.vmem [shape: f32[1,128], index: 4, kind: input, shape index: {}]   ;;  %s2002_s5 = inlined_call_operand.hbm [shape: f32[128,128], index: 5, kind: input, shape index: {}]   ;;  %s2003_s6 = inlined_call_operand.vmem [shape: f32[1,128], index: 6, kind: input, shape index: {}]   ;;  %s2004_s7 = inlined_call_operand.hbm [shape: f32[128,128], index: 7, kind: input, shape index: {}]   ;;  %s2005_s8 = inlined_call_operand.vmem [shape: f32[1,128], index: 8, kind: input, shape index: {}]   ;;  %s2006_s9 = inlined_call_operand.hbm [shape: f32[48,128], index: 9, kind: output, shape index: {}]  }
   0x1   :  { %2013 = sst [smem:[#allocation18_spill]] %s2005_s8 }
   0x2   :  { %2014 = sst [smem:[#allocation19_spill]] %s2006_s9 }
   0x3   :  { %14 = vsyncpa [#allocation3], 0 }
   0x4   :  { %16 = vsyncpa [#allocation3 + $0x1], 0 }
   0x5   :  { %17 = vsyncpa [#allocation6], 0 }
   0x6   :  { %18 = vsyncpa [#allocation9], 0 }
   0x7   :  { %19 = vsyncpa [#allocation4], 0 }
   0x8   :  { %21 = vsyncpa [#allocation4 + $0x1], 0  ;;  %s1705_s30 = smov 0   ;;  %s1707_s10 = smov 0  }
   0x9   :  { %s1709_s11 = smov 0   ;;  %s1711_s12 = smov 0  }
   0xa LB: > { %2015 = sst [smem:[#allocation16_spill]] %s1628_s30  ;;  %s1726_s13 = sadd.s32 4294967295, %s1640_s12   ;;  %s1640_s12 = sphi %s1711_s12, %s2039_s12   ;;  %s1636_s11 = sphi %s1709_s11, %s2038_s11   ;;  %s1632_s10 = sphi %s1707_s10, %s2037_s10   ;;  %s1628_s30 = sphi %s1705_s30, %s2036_s30  }
   0xb   : > { %s1011_s14 = sadd.s32 4294967294, %s1640_s12   ;;  %p47_p0 = scmp.ne.s32.totalorder %s1632_s10, %s1628_s30 }
   0xc   : > { %p2007_p1 = scmp.eq.s32.totalorder %s1726_s13, 0  ;;  %p245_p3 = scmp.eq.s32.totalorder %s1011_s14, 2 }
   0xd   : > { %p1012_p5 = scmp.ge.s32.totalorder %s1640_s12, 1  ;;  %p252_p7 = scmp.lt.s32.totalorder %s1640_s12, 4 }
   0xe   : > { %p1735_p4 = por %p2007_p1, %p47_p0  ;;  %p1740_p6 = por %p245_p3, %p47_p0 }
   0xf   : > { %p1745_p8 = pnand %p1012_p5, %p252_p7  ;;  %s1642_s18 = smov [#allocation5]  }
  0x10   : > { %s2016_s15 = scalar_select %p1735_p4, 1, 0 }
  0x11   : > { %s2017_s16 = scalar_select %p1740_p6, 1, 0 }
  0x12   : > { %s2019_s17 = scalar_select %p1745_p8, 1, 0 }
  0x13   : > { %2018 = sst [smem:[#allocation17_spill]] %s2017_s16  ;;  %s264_s19 = sshll.u32 %s1642_s18, 4  ;;  %s265_s19 = int_to_ptr.vmem [resolvable:$true] %s264_s19 }
  0x14   : > { %p1330_p9 = pneg %p1745_p8  ;;  %s1643_s21 = smov [#allocation8]  }
  0x15   : > { %s296_s22 = sshll.u32 %s1643_s21, 4  ;;  %s1424_s25 = scalar_lea.hbm %s1998_s1, 4096  ;;  %s297_s22 = int_to_ptr.vmem [resolvable:$true] %s296_s22 }
  0x16   : > { %p1753_p10 = pnand %p1330_p9, %p2007_p1  ;;  %p1425_p11 = scmp.ne.s32.totalorder %s1998_s1, %s1424_s25 }
  0x17   : > { %p1431_p3 = scmp.lt.u32.totalorder %s1424_s25, %s1998_s1 }
  0x18   : > { %p1765_p12 = pneg %p1753_p10 }
  0x1a   : > { %p1427_p13 = pnand %p1765_p12, %p1425_p11 }
  0x1c   : > { %p1428_p0 = pneg %p1427_p13 }
  0x1e   : > { %p1433_p5 = pnand %p1431_p3, %p1428_p0 }
  0x20   : > { %1436 = shalt.err (!%p1433_p5)
}
  0x21   : > { %s1437_s18 = scalar_lea.vmem %s265_s19, 4096  ;;  %p1445_p2 = scmp.lt.s32.totalorder %s265_s19, %s265_s19 }
  0x22   : > { %p1438_p7 = scmp.ne.s32.totalorder %s265_s19, %s1437_s18  ;;  %p1446_p6 = scmp.lt.s32.totalorder %s1437_s18, %s1437_s18 }
  0x24   : > { %p1440_p9 = pnand %p1438_p7, %p1765_p12  ;;  %p1447_p4 = por %p1446_p6, %p1445_p2 }
  0x26   : > { %p1441_p1 = pneg %p1440_p9 }
  0x28   : > { %p1448_p8 = pnand %p1447_p4, %p1441_p1 }
  0x2a   : > { %1451 = shalt.err (!%p1448_p8)
}
  0x2b   : > { %s1644_s21 = smov 256   ;;  %s1645_s23 = smov 16  }
  0x2c   : > { %1333 = dma.hbm_to_vmem [thread:$0]  (!%p1753_p10), %s1998_s1, 4096, %s265_s19, [#allocation6], %s1644_s21, %s1644_s21, %s1645_s23  }
  0x2d   : > { %s1646_s26 = smov [#allocation7]   ;;  %s1452_s16 = scalar_lea.hbm %s2002_s5, 2048 }
  0x2e   : > { %s280_s27 = sshll.u32 %s1646_s26, 4  ;;  %p1453_p1 = scmp.ne.s32.totalorder %s2002_s5, %s1452_s16  ;;  %s281_s27 = int_to_ptr.vmem [resolvable:$true] %s280_s27 }
  0x2f   : > { %p1459_p6 = scmp.lt.u32.totalorder %s1452_s16, %s2002_s5 }
  0x30   : > { %p1455_p2 = pnand %p1453_p1, %p1765_p12 }
  0x32   : > { %p1456_p4 = pneg %p1455_p2 }
  0x34   : > { %p1461_p8 = pnand %p1459_p6, %p1456_p4 }
  0x36   : > { %1464 = shalt.err (!%p1461_p8)
}
  0x37   : > { %s1465_s19 = scalar_lea.vmem %s297_s22, 2048  ;;  %p1473_p3 = scmp.lt.s32.totalorder %s297_s22, %s297_s22 }
  0x38   : > { %p1466_p11 = scmp.ne.s32.totalorder %s297_s22, %s1465_s19  ;;  %p1474_p5 = scmp.lt.s32.totalorder %s1465_s19, %s1465_s19 }
  0x3a   : > { %p1468_p13 = pnand %p1466_p11, %p1765_p12  ;;  %p1475_p7 = por %p1474_p5, %p1473_p3 }
  0x3c   : > { %p1469_p0 = pneg %p1468_p13 }
  0x3e   : > { %p1476_p9 = pnand %p1475_p7, %p1469_p0 }
  0x40   : > { %1479 = shalt.err (!%p1476_p9)
}
  0x41   : > { %s1647_s30 = smov 128   ;;  %s1648_s21 = smov 8  }
  0x42   : > { %1339 = dma.hbm_to_vmem [thread:$0]  (!%p1753_p10), %s2002_s5, 2048, %s297_s22, [#allocation9], %s1647_s30, %s1647_s30, %s1648_s21  }
  0x43   : > { %s1480_s24 = scalar_lea.hbm %s2000_s3, 4096 }
  0x44   : > { %p1481_p1 = scmp.ne.s32.totalorder %s2000_s3, %s1480_s24  ;;  %p1487_p6 = scmp.lt.u32.totalorder %s1480_s24, %s2000_s3 }
  0x46   : > { %p1483_p2 = pnand %p1481_p1, %p1765_p12 }
  0x48   : > { %p1484_p4 = pneg %p1483_p2 }
  0x4a   : > { %p1489_p8 = pnand %p1487_p6, %p1484_p4 }
  0x4c   : > { %1492 = shalt.err (!%p1489_p8)
}
  0x4d   : > { %s1493_s18 = scalar_lea.vmem %s281_s27, 4096  ;;  %p1501_p3 = scmp.lt.s32.totalorder %s281_s27, %s281_s27 }
  0x4e   : > { %p1494_p11 = scmp.ne.s32.totalorder %s281_s27, %s1493_s18  ;;  %p1502_p5 = scmp.lt.s32.totalorder %s1493_s18, %s1493_s18 }
  0x50   : > { %p1496_p13 = pnand %p1494_p11, %p1765_p12  ;;  %p1503_p7 = por %p1502_p5, %p1501_p3 }
  0x52   : > { %p1497_p0 = pneg %p1496_p13 }
  0x54   : > { %p1504_p9 = pnand %p1503_p7, %p1497_p0 }
  0x56   : > { %1507 = shalt.err (!%p1504_p9)
}
  0x57   : > { %1336 = dma.hbm_to_vmem [thread:$0]  (!%p1753_p10), %s2000_s3, 4096, %s281_s27, [#allocation6], %s1647_s30, %s1647_s30, %s1648_s21  }
  0x58   : > { %s1649_s8 = smov [#allocation10]   ;;  %s1508_s24 = scalar_lea.hbm %s2004_s7, 2048 }
  0x59   : > { %s312_s9 = sshll.u32 %s1649_s8, 4  ;;  %p1509_p1 = scmp.ne.s32.totalorder %s2004_s7, %s1508_s24  ;;  %s313_s9 = int_to_ptr.vmem [resolvable:$true] %s312_s9 }
  0x5a   : > { %p1515_p6 = scmp.lt.u32.totalorder %s1508_s24, %s2004_s7 }
  0x5b   : > { %p1511_p2 = pnand %p1509_p1, %p1765_p12 }
  0x5d   : > { %p1512_p4 = pneg %p1511_p2 }
  0x5f   : > { %p1517_p8 = pnand %p1515_p6, %p1512_p4 }
  0x61   : > { %1520 = shalt.err (!%p1517_p8)
}
  0x62   : > { %s1521_s27 = scalar_lea.vmem %s313_s9, 2048  ;;  %p1529_p3 = scmp.lt.s32.totalorder %s313_s9, %s313_s9 }
  0x63   : > { %p1522_p11 = scmp.ne.s32.totalorder %s313_s9, %s1521_s27  ;;  %p1530_p5 = scmp.lt.s32.totalorder %s1521_s27, %s1521_s27 }
  0x65   : > { %p1524_p13 = pnand %p1522_p11, %p1765_p12  ;;  %p1531_p7 = por %p1530_p5, %p1529_p3 }
  0x67   : > { %p1525_p0 = pneg %p1524_p13 }
  0x69   : > { %p1532_p9 = pnand %p1531_p7, %p1525_p0 }
  0x6b   : > { %1535 = shalt.err (!%p1532_p9)
}
  0x6c   : > { %1342 = dma.hbm_to_vmem [thread:$0]  (!%p1753_p10), %s2004_s7, 2048, %s313_s9, [#allocation9], %s1647_s30, %s1647_s30, %s1648_s21  }
  0x6d   : > { %s1845_s28 = sadd.s32 1, %s1640_s12   ;;  %s34_s20 = sadd.s32 1, %s1636_s11 }
  0x6e   : > { %s31_s19 = ssub.s32 %s1640_s12, %s1845_s28  ;;  %p41_p12 = scmp.ne.s32.totalorder %s1636_s11, %s1632_s10 }
  0x6f   : > { %p32_p1 = scmp.eq.s32.totalorder %s31_s19, 0  ;;  %p42_p2 = scmp.eq.s32.totalorder %s1640_s12, 0 }
  0x70   : > { %p2022_p4 = scmp.eq.s32.totalorder %s1726_s13, 2  ;;  %p1355_p8 = scmp.lt.s32.totalorder %s1640_s12, 3 }
  0x71   : > { %s1861_s16 = scalar_select %p32_p1, %s1636_s11, %s34_s20  }
  0x72   : > { %p1855_p6 = por %p2022_p4, %p41_p12  ;;  %p43_p11 = por %p42_p2, %p41_p12 }
  0x73   : > { %s329_s23 = sand.u32 1, %s1636_s11   ;;  %s1036_s9 = sshll.u32 %s1640_s12, 8 }
  0x74   : > { %s1018_s24 = sshll.u32 %s329_s23, 4  ;;  %s1868_s29 = scalar_lea.hbm %s1997_s0, %s1036_s9 }
  0x75   : > { %s333_s14 = scalar_lea.vmem [#allocation2], %s1018_s24  ;;  %p1872_p10 = pnand %p1355_p8, %p43_p11 }
  0x76   : > { %s340_s27 = sshll.u32 %s333_s14, 4  ;;  %s1876_s22 = scalar_lea.sflag [#allocation3], %s329_s23  ;;  %s1870_s27 = int_to_ptr.vmem [resolvable:$true] %s340_s27 }
  0x77   : > { %s1536_s20 = scalar_lea.hbm %s1868_s29, 256  ;;  %p1538_p0 = pneg %p1872_p10 }
  0x78   : > { %p1537_p13 = scmp.ne.s32.totalorder %s1868_s29, %s1536_s20  ;;  %s1541_s9 = scalar_lea.hbm %s1997_s0, 768 }
  0x79   : > { %p1542_p7 = scmp.lt.u32.totalorder %s1868_s29, %s1997_s0  ;;  %p1543_p9 = scmp.lt.u32.totalorder %s1541_s9, %s1536_s20 }
  0x7a   : > { %p1539_p3 = pnand %p1538_p0, %p1537_p13  ;;  %p1545_p1 = scmp.lt.u32.totalorder %s1536_s20, %s1868_s29 }
  0x7b   : > { %p1544_p12 = por %p1543_p9, %p1542_p7 }
  0x7c   : > { %p1540_p5 = pneg %p1539_p3 }
  0x7d   : > { %p1546_p2 = por %p1545_p1, %p1544_p12 }
  0x7f   : > { %p1547_p4 = pnand %p1546_p2, %p1540_p5 }
  0x81   : > { %1550 = shalt.err (!%p1547_p4)
}
  0x82   : > { %s1551_s23 = scalar_lea.vmem %s1870_s27, 256  ;;  %s1650_s14 = smov [#allocation2]  }
  0x83   : > { %p1552_p8 = scmp.ne.s32.totalorder %s1870_s27, %s1551_s23  ;;  %s1556_s19 = sshll.u32 %s1650_s14, 4  ;;  %s1557_s19 = int_to_ptr.vmem [resolvable:$false] %s1556_s19 }
  0x84   : > { %s1558_s24 = scalar_lea.vmem %s1557_s19, 512  ;;  %p1559_p3 = scmp.lt.s32.totalorder %s1870_s27, %s1557_s19 }
  0x85   : > { %p1554_p11 = pnand %p1552_p8, %p1538_p0  ;;  %p1560_p7 = scmp.lt.s32.totalorder %s1558_s24, %s1551_s23 }
  0x87   : > { %p1555_p13 = pneg %p1554_p11  ;;  %p1561_p9 = por %p1560_p7, %p1559_p3 }
  0x89   : > { %p1562_p12 = pnand %p1561_p9, %p1555_p13 }
  0x8b   : > { %1565 = shalt.err (!%p1562_p12)
}
  0x8c   : > { %1346 = dma.hbm_to_vmem [thread:$0]  (!%p1872_p10), %s1868_s29, 256, %s1870_s27, %s1876_s22, %s1647_s30, %s1647_s30, %s1648_s21  }
  0x8d   : > { %p2025_p0 = scmp.ne.s32.totalorder %s2019_s17, 0 }
  0x8e   : > { %s1910_s20 = sand.u32 (!%p2025_p0), 1, %s1632_s10   ;;  %p2026_p5 = scmp.ne.s32.totalorder (!%p2025_p0), %s2016_s15, 0 }
  0x8f   : > { %352 = sbr.rel (%p2025_p0) target bundleno = 1144 (0x478), region = 56  ;;  %s1022_s9 = sshll.u32 (!%p2025_p0), %s1910_s20, 4 }
  0x90   : > { %s355_s25 = scalar_lea.sflag (!%p2025_p0), [#allocation3], %s1910_s20  ;;  %s1916_s18 = scalar_lea.vmem (!%p2025_p0), [#allocation2], %s1022_s9 }
  0x96   : > { %1611 = dma.done.wait (%p2026_p5), %s355_s25, 256  }
  0x97   : > { %1613 = vsyncadd (%p2026_p5), %s355_s25, 4294967040  ;;  %p2027_p10 = scmp.eq.s32.totalorder %s1726_s13, 0 }
  0x99   : > { %1615 = dma.done.wait (%p2027_p10), [#allocation6], 8192   ;;  %p2028_p1 = pmov %p2027_p10 }
  0x9b   : > { %1617 = vsyncadd (%p2028_p1), [#allocation6], 4294959104  ;;  %p2029_p2 = pmov %p2028_p1 }
  0x9c   : > { %p2030_p4 = pmov %p2028_p1 }
  0x9d   : > { %1619 = dma.done.wait (%p2029_p2), [#allocation9], 4096  }
  0x9e   : > { %1621 = vsyncadd (%p2030_p4), [#allocation9], 4294963200  ;;  %v1651_v0 = vmov 0.0   ;;  %v414_v1 = vld [vmem:[#allocation5 + $0x8] sm:$0xff]  ;;  %v416_v2 = vld [vmem:[#allocation5 + $0x18] sm:$0xff]  ;;  %s2031_s23 = sld [smem:[#allocation18_spill]] }
  0x9f   : > { %521 = vmatprep.mubr.f32.mxu0 %v1651_v0  ;;  %v413_v3 = vld [vmem:[#allocation5] sm:$0xff]  ;;  %v1182_v4 = vpack.c.bf16 %v416_v2, %v414_v1  ;;  %v415_v5 = vld [vmem:[#allocation5 + $0x10] sm:$0xff]  ;;  %v418_v6 = vld [vmem:[#allocation5 + $0x28] sm:$0xff]  ;;  %s408_s14 = scalar_lea.vmem [#allocation11], %s1022_s9  ;;  %s1037_s24 = sshll.u32 %s1726_s13, 8 }
  0xa0   : > { %v420_v7 = vld [vmem:[#allocation5 + $0x38] sm:$0xff]  ;;  %v1184_v8 = vpack.c.bf16 %v415_v5, %v413_v3  ;;  %v417_v10 = vld [vmem:[#allocation5 + $0x20] sm:$0xff]  ;;  %v419_v11 = vld [vmem:[#allocation5 + $0x30] sm:$0xff]  ;;  %s900_s19 = sshll.u32 %s408_s14, 4  ;;  %s2032_s15 = sld [smem:[#allocation19_spill]]  ;;  %s1949_s19 = int_to_ptr.vmem [resolvable:$true] %s900_s19 }
  0xa1   : > { %v1186_v9 = vpack.c.bf16 %v420_v7, %v418_v6  ;;  %v422_v12 = vld [vmem:[#allocation5 + $0x48] sm:$0xff]  ;;  %1183 = vmatprep.subr.bf16.mxu0 %v1182_v4  ;;  %v424_v13 = vld [vmem:[#allocation5 + $0x58] sm:$0xff]  ;;  %v1188_v14 = vpack.c.bf16 %v419_v11, %v417_v10  ;;  %v421_v16 = vld [vmem:[#allocation5 + $0x40] sm:$0xff]  ;;  %s887_s9 = scalar_lea.sflag [#allocation4], %s1910_s20  ;;  %s1566_s30 = scalar_lea.vmem %s1949_s19, 256 }
  0xa2   : > { %1185 = vmatpush1.bf16.msra.mxu0 %v1184_v8  ;;  %v1190_v15 = vpack.c.bf16 %v424_v13, %v422_v12  ;;  %v423_v17 = vld [vmem:[#allocation5 + $0x50] sm:$0xff]  ;;  %v426_v18 = vld [vmem:[#allocation5 + $0x68] sm:$0xff]  ;;  %v428_v19 = vld [vmem:[#allocation5 + $0x78] sm:$0xff]  ;;  %p1567_p8 = scmp.ne.s32.totalorder %s1949_s19, %s1566_s30  ;;  %s1652_s13 = smov [#allocation11]  }
  0xa3   : > { %1187 = vmatprep.subr.bf16.mxu0 %v1186_v9  ;;  %v1192_v20 = vpack.c.bf16 %v423_v17, %v421_v16  ;;  %v1194_v21 = vpack.c.bf16 %v428_v19, %v426_v18  ;;  %v425_v22 = vld [vmem:[#allocation5 + $0x60] sm:$0xff]  ;;  %v427_v23 = vld [vmem:[#allocation5 + $0x70] sm:$0xff]  ;;  %v430_v24 = vld [vmem:[#allocation5 + $0x88] sm:$0xff]  ;;  %s1570_s21 = sshll.u32 %s1652_s13, 4  ;;  %s1571_s21 = int_to_ptr.vmem [resolvable:$false] %s1570_s21 }
  0xa4   : > { %v432_v25 = vld [vmem:[#allocation5 + $0x98] sm:$0xff]  ;;  %v429_v26 = vld [vmem:[#allocation5 + $0x80] sm:$0xff]  ;;  %v431_v27 = vld [vmem:[#allocation5 + $0x90] sm:$0xff]  ;;  %v1196_v30 = vpack.c.bf16 %v427_v23, %v425_v22  ;;  %p1568_p11 = pnand %p1567_p8, %p1855_p6  ;;  %s1572_s29 = scalar_lea.vmem %s1571_s21, 512 }
  0xa5   : > { %v566_v28 = vld [vmem:[#allocation7 + $0x80] sm:$0xff]  ;;  %v567_v29 = vld [vmem:[#allocation7 + $0x88] sm:$0xff]  ;;  %v568_v35 = vld [vmem:[#allocation7 + $0x90] sm:$0xff]  ;;  %v1198_v36 = vpack.c.bf16 %v432_v25, %v430_v24  ;;  %v1200_v46 = vpack.c.bf16 %v431_v27, %v429_v26  ;;  %p1573_p3 = scmp.lt.s32.totalorder %s1949_s19, %s1571_s21  ;;  %p1574_p7 = scmp.lt.s32.totalorder %s1572_s29, %s1566_s30 }
  0xa6   : > { %1189 = vmatpush1.bf16.msra.mxu0 %v1188_v14  ;;  %v434_v31 = vld [vmem:[#allocation5 + $0xa8] sm:$0xff]  ;;  %v1214_v32 = vpack.c.bf16 %v567_v29, %v566_v28  ;;  %v550_v33 = vld [vmem:[#allocation7] sm:$0xff]  ;;  %v569_v38 = vld [vmem:[#allocation7 + $0x98] sm:$0xff]  ;;  %s1954_s17 = scalar_lea.hbm %s2032_s15, %s1037_s24  ;;  %p1569_p13 = pneg %p1568_p11 }
  0xa7   : > { %1191 = vmatprep.subr.bf16.mxu0 %v1190_v15  ;;  %v551_v34 = vld [vmem:[#allocation7 + $0x8] sm:$0xff]  ;;  %v552_v39 = vld [vmem:[#allocation7 + $0x10] sm:$0xff]  ;;  %v553_v40 = vld [vmem:[#allocation7 + $0x18] sm:$0xff]  ;;  %v1218_v42 = vpack.c.bf16 %v569_v38, %v568_v35  ;;  %p1575_p9 = por %p1574_p7, %p1573_p3 }
  0xa8   : > { %v1216_v37 = vpack.c.bf16 %v551_v34, %v550_v33  ;;  %v436_v41 = vld [vmem:[#allocation5 + $0xb8] sm:$0xff]  ;;  %1215 = vmatprep.subr.bf16.mxu1 %v1214_v32  ;;  %v570_v43 = vld [vmem:[#allocation7 + $0xa0] sm:$0xff]  ;;  %v571_v44 = vld [vmem:[#allocation7 + $0xa8] sm:$0xff]  ;;  %v1220_v45 = vpack.c.bf16 %v553_v40, %v552_v39 }
  0xa9   : > { %v1222_v47 = vpack.c.bf16 %v571_v44, %v570_v43  ;;  %v554_v48 = vld [vmem:[#allocation7 + $0x20] sm:$0xff]  ;;  %v555_v49 = vld [vmem:[#allocation7 + $0x28] sm:$0xff]  ;;  %v1202_v50 = vpack.c.bf16 %v436_v41, %v434_v31  ;;  %v435_v52 = vld [vmem:[#allocation5 + $0xb0] sm:$0xff]  ;;  %v447_v41 = vlaneseq  ;;  %p1576_p12 = pnand %p1575_p9, %p1569_p13 }
  0xaa   : > { %1193 = vmatpush1.bf16.msra.mxu0 %v1192_v20  ;;  %1217 = vmatpush3.bf16.msra.mxu1 %v1216_v37  ;;  %v433_v51 = vld [vmem:[#allocation5 + $0xa0] sm:$0xff]  ;;  %v438_v53 = vld [vmem:[#allocation5 + $0xc8] sm:$0xff]  ;;  %v440_v54 = vld [vmem:[#allocation5 + $0xd8] sm:$0xff]  ;;  %v1224_v55 = vpack.c.bf16 %v555_v49, %v554_v48 }
  0xab   : > { %1195 = vmatprep.subr.bf16.mxu0 %v1194_v21  ;;  %1219 = vmatprep.subr.bf16.mxu1 %v1218_v42  ;;  %v1204_v56 = vpack.c.bf16 %v435_v52, %v433_v51  ;;  %v1206_v57 = vpack.c.bf16 %v440_v54, %v438_v53  ;;  %v437_v58 = vld [vmem:[#allocation5 + $0xc0] sm:$0xff]  ;;  %v439_v59 = vld [vmem:[#allocation5 + $0xd0] sm:$0xff]  ;;  %v442_v60 = vld [vmem:[#allocation5 + $0xe8] sm:$0xff]  ;;  %v448_v42 = vshrl.u32 %v447_v41, 7 }
  0xac   : > { %v444_v61 = vld [vmem:[#allocation5 + $0xf8] sm:$0xff]  ;;  %v1208_v62 = vpack.c.bf16 %v439_v59, %v437_v58  ;;  %v441_v1 = vld [vmem:[#allocation5 + $0xe0] sm:$0xff]  ;;  %v443_v2 = vld [vmem:[#allocation5 + $0xf0] sm:$0xff] }
  0xad   : > { %v1210_v63 = vpack.c.bf16 %v444_v61, %v442_v60  ;;  %v1212_v3 = vpack.c.bf16 %v443_v2, %v441_v1  ;;  %v411_v4 = vld [vmem:[%s1916_s18] sm:$0xff]  ;;  %v412_v5 = vld [vmem:[%s1916_s18 + $0x8] sm:$0xff]  ;;  %v449_v43 = vsub.s32 0, %v448_v42 }
  0xae   : > { %1197 = vmatpush1.bf16.msra.mxu0 %v1196_v30  ;;  %1221 = vmatpush3.bf16.msra.mxu1 %v1220_v45  ;;  %v572_v6 = vld [vmem:[#allocation7 + $0xb0] sm:$0xff]  ;;  %v573_v7 = vld [vmem:[#allocation7 + $0xb8] sm:$0xff]  ;;  %v574_v12 = vld [vmem:[#allocation7 + $0xc0] sm:$0xff]  ;;  %v453_v45 = vsub.s32 1, %v448_v42 }
  0xaf   : > { %1199 = vmatprep.subr.bf16.mxu0 %v1198_v36  ;;  %1223 = vmatprep.subr.bf16.mxu1 %v1222_v47  ;;  %v1226_v8 = vpack.c.bf16 %v573_v7, %v572_v6  ;;  %v556_v9 = vld [vmem:[#allocation7 + $0x30] sm:$0xff]  ;;  %v557_v10 = vld [vmem:[#allocation7 + $0x38] sm:$0xff]  ;;  %v575_v13 = vld [vmem:[#allocation7 + $0xc8] sm:$0xff] }
  0xb0   : > { %v1228_v11 = vpack.c.bf16 %v557_v10, %v556_v9  ;;  %v1230_v14 = vpack.c.bf16 %v575_v13, %v574_v12  ;;  %v558_v15 = vld [vmem:[#allocation7 + $0x40] sm:$0xff]  ;;  %v559_v16 = vld [vmem:[#allocation7 + $0x48] sm:$0xff]  ;;  %v576_v18 = vld [vmem:[#allocation7 + $0xd0] sm:$0xff] }
  0xb1   : > { %v1232_v17 = vpack.c.bf16 %v559_v16, %v558_v15  ;;  %v560_v20 = vld [vmem:[#allocation7 + $0x50] sm:$0xff]  ;;  %v561_v21 = vld [vmem:[#allocation7 + $0x58] sm:$0xff]  ;;  %v578_v23 = vld [vmem:[#allocation7 + $0xe0] sm:$0xff] }
  0xb2   : > { %1201 = vmatpush1.bf16.msra.mxu0 %v1200_v46  ;;  %1225 = vmatpush3.bf16.msra.mxu1 %v1224_v55  ;;  %v1236_v22 = vpack.c.bf16 %v561_v21, %v560_v20  ;;  %v579_v24 = vld [vmem:[#allocation7 + $0xe8] sm:$0xff]  ;;  %v562_v26 = vld [vmem:[#allocation7 + $0x60] sm:$0xff]  ;;  %v580_v29 = vld [vmem:[#allocation7 + $0xf0] sm:$0xff] }
  0xb3   : > { %1203 = vmatprep.subr.bf16.mxu0 %v1202_v50  ;;  %1227 = vmatprep.subr.bf16.mxu1 %v1226_v8  ;;  %v1238_v25 = vpack.c.bf16 %v579_v24, %v578_v23  ;;  %v563_v27 = vld [vmem:[#allocation7 + $0x68] sm:$0xff]  ;;  %v581_v30 = vld [vmem:[#allocation7 + $0xf8] sm:$0xff]  ;;  %v564_v32 = vld [vmem:[#allocation7 + $0x70] sm:$0xff] }
  0xb4   : > { %v1240_v28 = vpack.c.bf16 %v563_v27, %v562_v26  ;;  %v1242_v31 = vpack.c.bf16 %v581_v30, %v580_v29  ;;  %v565_v33 = vld [vmem:[#allocation7 + $0x78] sm:$0xff]  ;;  %v672_v35 = vld [vmem:[#allocation8] sm:$0xff]  ;;  %v673_v36 = vld [vmem:[#allocation8 + $0x8] sm:$0xff] }
  0xb5   : > { %v1244_v34 = vpack.c.bf16 %v565_v33, %v564_v32  ;;  %v674_v37 = vld [vmem:[#allocation8 + $0x10] sm:$0xff]  ;;  %v1246_v38 = vpack.c.bf16 %v673_v36, %v672_v35  ;;  %v675_v39 = vld [vmem:[#allocation8 + $0x18] sm:$0xff]  ;;  %v445_v44 = vld [vmem:[%s1999_s2] sm:$0x3] }
  0xb6   : > { %1205 = vmatpush1.bf16.msra.mxu0 %v1204_v56  ;;  %1229 = vmatpush3.bf16.msra.mxu1 %v1228_v11  ;;  %v1250_v40 = vpack.c.bf16 %v675_v39, %v674_v37  ;;  %v450_v46 = vrot.slane %v445_v44, %v449_v43  ;;  %v454_v47 = vrot.slane %v445_v44, %v453_v45  ;;  %v676_v9 = vld [vmem:[#allocation8 + $0x20] sm:$0xff]  ;;  %v677_v10 = vld [vmem:[#allocation8 + $0x28] sm:$0xff]  ;;  %v678_v12 = vld [vmem:[#allocation8 + $0x30] sm:$0xff] }
  0xb7   : > { %1207 = vmatprep.subr.bf16.mxu0 %v1206_v57  ;;  %1231 = vmatprep.subr.bf16.mxu1 %v1230_v14  ;;  %v1254_v11 = vpack.c.bf16 %v677_v10, %v676_v9  ;;  %v679_v13 = vld [vmem:[#allocation8 + $0x38] sm:$0xff]  ;;  %v680_v15 = vld [vmem:[#allocation8 + $0x40] sm:$0xff]  ;;  %v681_v16 = vld [vmem:[#allocation8 + $0x48] sm:$0xff] }
  0xb8   : > { %v1258_v14 = vpack.c.bf16 %v679_v13, %v678_v12  ;;  %v684_v20 = vld [vmem:[#allocation8 + $0x60] sm:$0xff]  ;;  %v685_v21 = vld [vmem:[#allocation8 + $0x68] sm:$0xff]  ;;  %v686_v23 = vld [vmem:[#allocation8 + $0x70] sm:$0xff] }
  0xb9   : > { %v687_v24 = vld [vmem:[#allocation8 + $0x78] sm:$0xff]  ;;  %v778_v26 = vld [vmem:[#allocation10] sm:$0xff]  ;;  %v779_v27 = vld [vmem:[#allocation10 + $0x8] sm:$0xff] }
  0xba   : > { %1209 = vmatpush1.bf16.msra.mxu0 %v1208_v62  ;;  %1233 = vmatpush3.bf16.msra.mxu1 %v1232_v17  ;;  %v1262_v17 = vpack.c.bf16 %v681_v16, %v680_v15  ;;  %v1278_v29 = vpack.c.bf16 %v779_v27, %v778_v26  ;;  %v781_v30 = vld [vmem:[#allocation10 + $0x18] sm:$0xff]  ;;  %v782_v32 = vld [vmem:[#allocation10 + $0x20] sm:$0xff]  ;;  %v783_v33 = vld [vmem:[#allocation10 + $0x28] sm:$0xff] }
  0xbb   : > { %1211 = vmatprep.subr.bf16.mxu0 %v1210_v63  ;;  %v1028_v36 = vld [vmem:[%s2001_s4] ss:$0 sm:$0xff] }
  0xbe   : > { %1213 = vmatpush1.bf16.msra.mxu0 %v1212_v3 }
  0xbf   : > { %1247 = vmatprep.subr.bf16.mxu0 %v1246_v38 }
  0xc1   : > { %522 = vmatmul.mubr.f32.vlgmr.msra.gmra.mrb[0].mxu0 %v411_v4 }
  0xc2   : > { %527 = vmatprep.mubr.f32.mxu0 %v1651_v0  ;;  %v577_v0 = vld [vmem:[#allocation7 + $0xd8] sm:$0xff]  ;;  %1249 = vmatpush3.bf16.msra.mxu0 %v1246_v38 }
  0xc3   : > { %v1234_v19 = vpack.c.bf16 %v577_v0, %v576_v18  ;;  %1251 = vmatprep.subr.bf16.mxu0 %v1250_v40  ;;  %v682_v18 = vld [vmem:[#allocation8 + $0x50] sm:$0xff]  ;;  %v683_v0 = vld [vmem:[#allocation8 + $0x58] sm:$0xff] }
  0xc5   : > { %528 = vmatmul.mubr.f32.gmra.mrb[2].mxu0 %v412_v5  ;;  %1235 = vmatprep.subr.bf16.mxu1 %v1234_v19  ;;  %v1266_v19 = vpack.c.bf16 %v683_v0, %v682_v18 }
  0xc6   : > { %1237 = vmatpush3.bf16.msra.mxu1 %v1236_v22  ;;  %1253 = vmatpush3.bf16.msra.mxu0 %v1250_v40  ;;  %v1270_v22 = vpack.c.bf16 %v685_v21, %v684_v20 }
  0xc7   : > { %1239 = vmatprep.subr.bf16.mxu1 %v1238_v25  ;;  %1255 = vmatprep.subr.bf16.mxu0 %v1254_v11  ;;  %v1274_v25 = vpack.c.bf16 %v687_v24, %v686_v23 }
  0xca   : > { %1241 = vmatpush3.bf16.msra.mxu1 %v1240_v28  ;;  %1257 = vmatpush3.bf16.msra.mxu0 %v1254_v11  ;;  %v780_v28 = vld [vmem:[#allocation10 + $0x10] sm:$0xff] }
  0xcb   : > { %1243 = vmatprep.subr.bf16.mxu1 %v1242_v31  ;;  %1259 = vmatprep.subr.bf16.mxu0 %v1258_v14  ;;  %v1282_v31 = vpack.c.bf16 %v781_v30, %v780_v28 }
  0xce   : > { %1245 = vmatpush3.bf16.msra.mxu1 %v1244_v34  ;;  %1261 = vmatpush3.bf16.msra.mxu0 %v1258_v14  ;;  %v1286_v34 = vpack.c.bf16 %v783_v33, %v782_v32 }
  0xcf   : > { %1263 = vmatprep.subr.bf16.mxu0 %v1262_v17  ;;  %1279 = vmatprep.subr.bf16.mxu1 %v1278_v29 }
  0xd2   : > { %1265 = vmatpush3.bf16.msra.mxu0 %v1262_v17  ;;  %v1030_v17 = vld [vmem:[%s2031_s23] ss:$0 sm:$0xff] }
  0xd3   : > { %1267 = vmatprep.subr.bf16.mxu0 %v1266_v19 }
  0xd6   : > { %1269 = vmatpush3.bf16.msra.mxu0 %v1266_v19 }
  0xd7   : > { %1271 = vmatprep.subr.bf16.mxu0 %v1270_v22 }
  0xda   : > { %1273 = vmatpush3.bf16.msra.mxu0 %v1270_v22 }
  0xdb   : > { %1275 = vmatprep.subr.bf16.mxu0 %v1274_v25 }
  0xde   : > { %1277 = vmatpush3.bf16.msra.mxu0 %v1274_v25 }
 0x194   : > { %v523_v48 = vpop.f32.mrb[0].mxu0 }
 0x195   : > { %v524_v49 = vadd.f32 %v523_v48, %v450_v46  ;;  %v525_v50 = vpop.f32.mrb[1].mxu0 }
 0x196   : > { %v526_v51 = vadd.f32 %v525_v50, %v454_v47 }
 0x197   : > { %v534_v52 = vmul.f32 0.5, %v524_v49 }
 0x198   : > { %v535_v53 = vmul.f32 0.5, %v526_v51  ;;  %v529_v54 = vpop.f32.mrb[2].mxu0 }
 0x199   : > { %1404 = vtanh.f32 %v534_v52  ;;  %v530_v55 = vadd.f32 %v529_v54, %v450_v46  ;;  %v531_v56 = vpop.f32.mrb[3].mxu0  ;;  %v784_v52 = vld [vmem:[#allocation10 + $0x30] sm:$0xff] }
 0x19a   : > { %1406 = vtanh.f32 %v535_v53  ;;  %v532_v57 = vadd.f32 %v531_v56, %v454_v47  ;;  %v785_v53 = vld [vmem:[#allocation10 + $0x38] sm:$0xff]  ;;  %v787_v56 = vld [vmem:[#allocation10 + $0x48] sm:$0xff] }
 0x19b   : > { %v536_v58 = vmul.f32 0.5, %v530_v55  ;;  %v1290_v54 = vpack.c.bf16 %v785_v53, %v784_v52  ;;  %v786_v55 = vld [vmem:[#allocation10 + $0x40] sm:$0xff] }
 0x19c   : > { %v537_v59 = vmul.f32 0.5, %v532_v57  ;;  %v1294_v57 = vpack.c.bf16 %v787_v56, %v786_v55 }
 0x19d   : > { %1408 = vtanh.f32 %v536_v58  ;;  %v788_v58 = vld [vmem:[#allocation10 + $0x50] sm:$0xff] }
 0x19e   : > { %1410 = vtanh.f32 %v537_v59  ;;  %v789_v59 = vld [vmem:[#allocation10 + $0x58] sm:$0xff] }
 0x1a3   : > { %v1405_v60 = vpop.eup %1404 }
 0x1a4   : > { %v1407_v61 = vpop.eup %1406  ;;  %v542_v62 = vmul.f32 0.5, %v1405_v60  ;;  %v1298_v60 = vpack.c.bf16 %v789_v59, %v788_v58 }
 0x1a5   : > { %v543_v63 = vmul.f32 0.5, %v1407_v61  ;;  %v790_v61 = vld [vmem:[#allocation10 + $0x60] sm:$0xff] }
 0x1a6   : > { %v546_v5 = vadd.f32 0.5, %v542_v62  ;;  %v791_v62 = vld [vmem:[#allocation10 + $0x68] sm:$0xff] }
 0x1a7   : > { %v1409_v1 = vpop.eup %1408  ;;  %v547_v2 = vadd.f32 0.5, %v543_v63  ;;  %v1302_v63 = vpack.c.bf16 %v791_v62, %v790_v61 }
 0x1a8   : > { %v1411_v3 = vpop.eup %1410  ;;  %v544_v4 = vmul.f32 0.5, %v1409_v1  ;;  %v792_v1 = vld [vmem:[#allocation10 + $0x70] sm:$0xff] }
 0x1a9   : > { %v545_v6 = vmul.f32 0.5, %v1411_v3  ;;  %653 = vmatprep.mubr.f32.mxu1 %v547_v2  ;;  %v793_v2 = vld [vmem:[#allocation10 + $0x78] sm:$0xff] }
 0x1aa   : > { %654 = vmatmul.mubr.f32.vlgmr.msra.gmra.mrb[0].mxu1 %v546_v5  ;;  %v548_v8 = vadd.f32 0.5, %v544_v4  ;;  %v1306_v3 = vpack.c.bf16 %v793_v2, %v792_v1  ;;  %v1029_v4 = vld [vmem:[%s2003_s6] ss:$0 sm:$0xff] }
 0x1ab   : > { %v549_v7 = vadd.f32 0.5, %v545_v6  ;;  %1281 = vmatpush3.bf16.msra.mxu1 %v1278_v29 }
 0x1ac   : > { %1283 = vmatprep.subr.bf16.mxu1 %v1282_v31 }
 0x1ad   : > { %658 = vmatprep.mubr.f32.mxu1 %v549_v7 }
 0x1ae   : > { %659 = vmatmul.mubr.f32.gmra.mrb[2].mxu1 %v548_v8 }
 0x1af   : > { %1285 = vmatpush3.bf16.msra.mxu1 %v1282_v31 }
 0x1b0   : > { %1287 = vmatprep.subr.bf16.mxu1 %v1286_v34 }
 0x1b3   : > { %1289 = vmatpush3.bf16.msra.mxu1 %v1286_v34 }
 0x1b4   : > { %1291 = vmatprep.subr.bf16.mxu1 %v1290_v54 }
 0x1b7   : > { %1293 = vmatpush3.bf16.msra.mxu1 %v1290_v54 }
 0x1b8   : > { %1295 = vmatprep.subr.bf16.mxu1 %v1294_v57 }
 0x1bb   : > { %1297 = vmatpush3.bf16.msra.mxu1 %v1294_v57 }
 0x1bc   : > { %1299 = vmatprep.subr.bf16.mxu1 %v1298_v60 }
 0x1bf   : > { %1301 = vmatpush3.bf16.msra.mxu1 %v1298_v60 }
 0x1c0   : > { %1303 = vmatprep.subr.bf16.mxu1 %v1302_v63 }
 0x1c3   : > { %1305 = vmatpush3.bf16.msra.mxu1 %v1302_v63 }
 0x1c4   : > { %1307 = vmatprep.subr.bf16.mxu1 %v1306_v3 }
 0x1c7   : > { %1309 = vmatpush3.bf16.msra.mxu1 %v1306_v3 }
 0x27d   : > { %v1070_v35 = vpop.f32.mrb[0].mxu1 }
 0x27e   : > { %v1071_v37 = vpop.f32.mrb[1].mxu1 }
 0x27f   : > { %v1072_v38 = vadd.f32 %v1071_v37, %v1070_v35 }
 0x281   : > { %v656_v39 = vadd.f32 %v1072_v38, %v1028_v36  ;;  %v1073_v40 = vpop.f32.mrb[2].mxu1 }
 0x282   : > { %v1074_v41 = vpop.f32.mrb[3].mxu1 }
 0x283   : > { %v664_v42 = vmul.f32 0.5, %v656_v39  ;;  %v1075_v43 = vadd.f32 %v1074_v41, %v1073_v40 }
 0x285   : > { %1412 = vtanh.f32 %v664_v42  ;;  %v661_v44 = vadd.f32 %v1075_v43, %v1028_v36 }
 0x287   : > { %v665_v45 = vmul.f32 0.5, %v661_v44 }
 0x289   : > { %1414 = vtanh.f32 %v665_v45 }
 0x28f   : > { %v1413_v46 = vpop.eup %1412 }
 0x290   : > { %v668_v47 = vmul.f32 0.5, %v1413_v46 }
 0x292   : > { %v670_v48 = vadd.f32 0.5, %v668_v47 }
 0x293   : > { %v1415_v49 = vpop.eup %1414 }
 0x294   : > { %v669_v50 = vmul.f32 0.5, %v1415_v49  ;;  %1144 = vmatprep.mubr.f32.mxu0 %v670_v48 }
 0x296   : > { %v671_v51 = vadd.f32 0.5, %v669_v50 }
 0x298   : > { %1145 = vmatmul.mubr.f32.vlgmr.msra.gmra.mrb[4].mxu0 %v671_v51 }
 0x36b   : > { %v1146_v5 = vpop.f32.mrb[4].mxu0 }
 0x36c   : > { %v767_v6 = vadd.f32 %v1146_v5, %v1029_v4  ;;  %v761_v7 = vpop.f32.mrb[5].mxu0 }
 0x36d   : > { %v762_v8 = vadd.f32 %v1029_v4, %v761_v7 }
 0x36e   : > { %v771_v9 = vmul.f32 0.5, %v767_v6 }
 0x36f   : > { %v770_v10 = vmul.f32 0.5, %v762_v8 }
 0x370   : > { %1416 = vtanh.f32 %v771_v9 }
 0x371   : > { %1418 = vtanh.f32 %v770_v10 }
 0x37a   : > { %v1417_v11 = vpop.eup %1416 }
 0x37b   : > { %v1419_v12 = vpop.eup %1418  ;;  %v775_v13 = vmul.f32 0.5, %v1417_v11 }
 0x37c   : > { %v774_v14 = vmul.f32 0.5, %v1419_v12 }
 0x37d   : > { %v777_v16 = vadd.f32 0.5, %v775_v13 }
 0x37e   : > { %v776_v15 = vadd.f32 0.5, %v774_v14 }
 0x380   : > { %1179 = vmatprep.mubr.f32.mxu1 %v776_v15 }
 0x381   : > { %1180 = vmatmul.mubr.f32.vlgmr.msra.gmra.mrb[4].mxu1 %v777_v16 }
 0x454   : > { %v1181_v18 = vpop.f32.mrb[4].mxu1 }
 0x455   : > { %v873_v0 = vadd.f32 %v1181_v18, %v1030_v17  ;;  %v867_v19 = vpop.f32.mrb[5].mxu1 }
 0x456   : > { %v868_v20 = vadd.f32 %v1030_v17, %v867_v19 }
 0x457   : > { %v877_v21 = vmul.f32 0.5, %v873_v0 }
 0x458   : > { %v876_v22 = vmul.f32 0.5, %v868_v20 }
 0x459   : > { %1420 = vtanh.f32 %v877_v21 }
 0x45a   : > { %1422 = vtanh.f32 %v876_v22 }
 0x463   : > { %v1421_v23 = vpop.eup %1420 }
 0x464   : > { %v1423_v24 = vpop.eup %1422  ;;  %v881_v25 = vmul.f32 0.5, %v1421_v23 }
 0x465   : > { %v880_v26 = vmul.f32 0.5, %v1423_v24 }
 0x466   : > { %v883_v27 = vadd.f32 0.5, %v881_v25 }
 0x467   : > { %v882_v28 = vadd.f32 0.5, %v880_v26 }
 0x468   : > { %885 = vst [vmem:[%s408_s14 + $0x8] sm:$0xff] %v883_v27 }
 0x469   : > { %884 = vst [vmem:[%s408_s14] sm:$0xff] %v882_v28 }
 0x46a   : > { %1579 = shalt.err (!%p1576_p12)
}
 0x46b   : > { %s1580_s27 = scalar_lea.hbm %s1954_s17, 256  ;;  %s1584_s23 = scalar_lea.hbm %s2032_s15, 768 }
 0x46c   : > { %p1581_p0 = scmp.ne.s32.totalorder %s1954_s17, %s1580_s27  ;;  %p1585_p1 = scmp.lt.u32.totalorder %s1954_s17, %s2032_s15 }
 0x46d   : > { %p1586_p2 = scmp.lt.u32.totalorder %s1584_s23, %s1580_s27  ;;  %p1588_p8 = scmp.lt.u32.totalorder %s1580_s27, %s1954_s17 }
 0x46e   : > { %p1582_p5 = pnand %p1581_p0, %p1855_p6 }
 0x46f   : > { %p1587_p4 = por %p1586_p2, %p1585_p1 }
 0x470   : > { %p1583_p10 = pneg %p1582_p5 }
 0x471   : > { %p1589_p11 = por %p1588_p8, %p1587_p4 }
 0x473   : > { %p1590_p13 = pnand %p1589_p11, %p1583_p10 }
 0x475   : > { %1593 = shalt.err (!%p1590_p13)
}
 0x476   : > { %s1653_s25 = smov 128   ;;  %s1654_s18 = smov 8  }
 0x477   : > { %1328 = dma.vmem_to_hbm [thread:$0]  (%p1855_p6), %s1949_s19, 256, %s1954_s17, %s887_s9, %s1653_s25, %s1653_s25, %s1654_s18  }
 0x478 PF: > { %s2033_s30 = sld [smem:[#allocation16_spill]]  ;;  %s2034_s13 = sld [smem:[#allocation17_spill]] }
 0x479   : > { %p1360_p3 = scmp.ge.s32.totalorder %s1640_s12, 2 }
 0x47e   : > { %s915_s21 = sand.u32 1, %s2033_s30   ;;  %p2035_p7 = scmp.ne.s32.totalorder %s2034_s13, 0 }
 0x47f   : > { %s916_s29 = scalar_lea.sflag [#allocation4], %s915_s21 }
 0x480   : > { %p1348_p9 = pnand %p1360_p3, %p2035_p7 }
 0x482   : > { %1623 = dma.done.wait (!%p1348_p9), %s916_s29, 256  }
 0x483   : > { %1625 = vsyncadd (!%p1348_p9), %s916_s29, 4294967040  ;;  %p24_p12 = scmp.ge.s32.totalorder %s1845_s28, 5   ;;  %s2036_s30 = smov %s1632_s10 }
 0x484   : > { %s2037_s10 = smov %s1636_s11  ;;  %s2038_s11 = smov %s1861_s16 }
 0x485   : > { %s2039_s12 = smov %s1845_s28  ;;  %26 = sbr.rel (!%p24_p12) target bundleno = 10 (0xa), region = 117 }
 0x48c   :  { %921 = vsyncpa [#allocation3], 1 }
 0x48d   :  { %923 = vsyncpa [#allocation3 + $0x1], 1 }
 0x48e   :  { %924 = vsyncpa [#allocation6], 1 }
 0x48f   :  { %925 = vsyncpa [#allocation9], 1 }
 0x490   :  { %926 = vsyncpa [#allocation4], 1 }
 0x491   :  { %928 = vsyncpa [#allocation4 + $0x1], 1 }

</bundles_post_ra>
